<compile_context>
chip_gen: v6e
topology: v6e:2x2x1
jax: 0.10.0
libtpu: 0.0.40
codegen_flags: <defaults>
</compile_context>

<pallas_src>
import jax
import jax.numpy as jnp
from jax.experimental import pallas as pl
from jax.experimental.pallas import tpu as pltpu

HIDDEN = 512


def _round_up(x, m):
    return ((x + m - 1) // m) * m


def _critic_kernel(x_ref, w1_ref, b1_ref, w2t_ref, b2_ref, o_ref):
    # x_ref  : (TB, Dp)   bf16   one batch tile
    # w1_ref : (Dp, 512)  bf16   resident
    # b1_ref : (1, 512)   f32    resident
    # w2t_ref: (1, 512)   f32    resident (transposed second-layer weight)
    # b2_ref : (1, 1)     f32    resident
    # o_ref  : (1, TB)    f32    lane-dense output block
    h = jnp.dot(x_ref[...], w1_ref[...], preferred_element_type=jnp.float32)
    h = jnp.maximum(h + b1_ref[...], 0.0)                  # bias + ReLU (VPU)
    # Second layer as elementwise mul (VPU) + lane reduce (XLU); MXU stays free.
    v = jnp.sum(h * w2t_ref[...], axis=-1)                 # (TB,)
    o_ref[...] = (v.reshape(1, -1) + b2_ref[...]).astype(o_ref.dtype)


def centralized_critic(states, w1, b1, w2, b2, *, tile_b=512):
    """states: [B, num_agents*obs_dim] -> value estimates [B, 1] (float32).

    w1: [D, 512] (transpose of PyTorch layout), b1: [512]/[1,512],
    w2: [512, 1]/[512], b2: scalar-like. Computes relu(x@W1+b1)@W2+b2.
    """
    B, D = states.shape
    assert w1.shape == (D, HIDDEN)

    # Pad contraction dim to a multiple of 128 (lane-dense x loads, full MXU K).
    Dp = _round_up(D, 128)
    # Batch tile: multiple of 128 rows, capped at tile_b; grid pipelines over it.
    TB = min(_round_up(tile_b, 128), _round_up(B, 128))
    Bp = _round_up(B, TB)
    num_tiles = Bp // TB

    # bf16 inputs for the first matmul (accumulation stays f32 in-kernel).
    # TODO(synk): in a real training loop keep states/w1 in bf16 upstream so
    # these casts/pads fuse away instead of being an extra HBM pass.
    x = jnp.pad(states.astype(jnp.bfloat16), ((0, Bp - B), (0, Dp - D)))
    w1b = jnp.pad(w1.astype(jnp.bfloat16), ((0, Dp - D), (0, 0)))
    b1r = jnp.asarray(b1, jnp.float32).reshape(1, HIDDEN)
    w2t = jnp.asarray(w2, jnp.float32).reshape(1, HIDDEN)
    b2r = jnp.asarray(b2, jnp.float32).reshape(1, 1)

    out = pl.pallas_call(
        _critic_kernel,
        out_shape=jax.ShapeDtypeStruct((1, Bp), jnp.float32),
        grid_spec=pltpu.PrefetchScalarGridSpec(
            num_scalar_prefetch=0,
            grid=(num_tiles,),
            in_specs=[
                pl.BlockSpec((TB, Dp), lambda i: (i, 0)),       # x tile (pipelined)
                pl.BlockSpec((Dp, HIDDEN), lambda i: (0, 0)),   # w1   (resident)
                pl.BlockSpec((1, HIDDEN), lambda i: (0, 0)),    # b1   (resident)
                pl.BlockSpec((1, HIDDEN), lambda i: (0, 0)),    # w2^T (resident)
                pl.BlockSpec((1, 1), lambda i: (0, 0)),         # b2   (resident)
            ],
            out_specs=pl.BlockSpec((1, TB), lambda i: (0, i)),  # lane-dense out
        ),
        compiler_params=pltpu.CompilerParams(
            dimension_semantics=("parallel",)),
    )(x, w1b, b1r, w2t, b2r)

    return out.reshape(Bp)[:B].reshape(B, 1)


def init_params(key, num_agents, obs_dim):
    """Deterministic synthetic init mimicking layer_init (orthogonal-ish, bias=0)."""
    in_dim = num_agents * obs_dim
    k1, k2 = jax.random.split(key)

    def ortho(k, shape, gain):
        a = jax.random.normal(k, shape, dtype=jnp.float32)
        q, _ = jnp.linalg.qr(a if shape[0] >= shape[1] else a.T)
        q = q if shape[0] >= shape[1] else q.T
        return (gain * q[: shape[0], : shape[1]]).astype(jnp.float32)

    w1 = ortho(k1, (in_dim, HIDDEN), gain=jnp.sqrt(2.0))    # [D, 512]
    b1 = jnp.zeros((1, HIDDEN), dtype=jnp.float32)
    w2 = ortho(k2, (HIDDEN, 1), gain=1.0)                   # [512, 1]
    b2 = jnp.zeros((1, 1), dtype=jnp.float32)
    return w1, b1, w2, b2


if __name__ == "__main__":
    num_agents, obs_dim, batch = 4, 8, 8
    key = jax.random.PRNGKey(0)
    kx, kp = jax.random.split(key)

    states = jax.random.normal(kx, (batch, num_agents * obs_dim), dtype=jnp.float32)
    w1, b1, w2, b2 = init_params(kp, num_agents, obs_dim)

    fwd = jax.jit(centralized_critic)
    out = fwd(states, w1, b1, w2, b2)
    jax.block_until_ready(out)

    # Plain-JAX f32 reference; looser tolerance because layer 1 runs in bf16
    # on the MXU (accumulation is still f32).
    ref = jnp.maximum(states @ w1 + b1, 0.0) @ w2 + b2
    assert out.shape == (batch, 1)
    assert jnp.allclose(out, ref, atol=2e-2, rtol=2e-2), float(jnp.max(jnp.abs(out - ref)))

    print("KERNEL_OK")
</pallas_src>

<mosaic_0001>
module attributes {stable_mosaic.version = 11 : i64} {
  func.func @_critic_kernel(%arg0: i32, %arg1: memref<128x128xbf16, #tpu.memory_space<vmem>>, %arg2: memref<128x512xbf16, #tpu.memory_space<vmem>>, %arg3: memref<1x512xf32, #tpu.memory_space<vmem>>, %arg4: memref<1x512xf32, #tpu.memory_space<vmem>>, %arg5: memref<1x1xf32, #tpu.memory_space<vmem>>, %arg6: memref<1x128xf32, #tpu.memory_space<vmem>>) attributes {dimension_semantics = [#tpu.dimension_semantics<parallel>], iteration_bounds = array<i64: 1>, scalar_prefetch = 0 : i64, scratch_operands = 0 : i64, tpu.core_type = #tpu.core_type<tc>, window_params = [{transform_indices = @transform_0, window_bounds = array<i64: 128, 128>}, {pipeline_mode = #tpu.pipeline_mode<synchronous>, transform_indices = @transform_1, window_bounds = array<i64: 128, 512>}, {pipeline_mode = #tpu.pipeline_mode<synchronous>, transform_indices = @transform_2, window_bounds = array<i64: 1, 512>}, {pipeline_mode = #tpu.pipeline_mode<synchronous>, transform_indices = @transform_3, window_bounds = array<i64: 1, 512>}, {pipeline_mode = #tpu.pipeline_mode<synchronous>, transform_indices = @transform_4, window_bounds = array<i64: 1, 1>}, {transform_indices = @transform_5, window_bounds = array<i64: 1, 128>}]} {
    %c0 = arith.constant 0 : index
    %c0_0 = arith.constant 0 : index
    %0 = vector.load %arg1[%c0, %c0_0] : memref<128x128xbf16, #tpu.memory_space<vmem>>, vector<128x128xbf16>
    %c0_1 = arith.constant 0 : index
    %c0_2 = arith.constant 0 : index
    %1 = vector.load %arg2[%c0_1, %c0_2] : memref<128x512xbf16, #tpu.memory_space<vmem>>, vector<128x512xbf16>
    %cst = arith.constant dense<0.000000e+00> : vector<128x512xf32>
    %2 = tpu.matmul %0, %1, %cst {dimension_numbers = #tpu.dot_dimension_numbers<[1], [0], [0], [1], [0, 0, 1, 1], [], []>} : vector<128x128xbf16>, vector<128x512xbf16>, vector<128x512xf32> -> vector<128x512xf32>
    %c0_3 = arith.constant 0 : index
    %c0_4 = arith.constant 0 : index
    %3 = vector.load %arg3[%c0_3, %c0_4] : memref<1x512xf32, #tpu.memory_space<vmem>>, vector<1x512xf32>
    %4 = vector.broadcast %3 : vector<1x512xf32> to vector<128x512xf32>
    %5 = arith.addf %2, %4 : vector<128x512xf32>
    %cst_5 = arith.constant 0.000000e+00 : f32
    %6 = vector.broadcast %cst_5 : f32 to vector<128x512xf32>
    %7 = arith.maximumf %5, %6 : vector<128x512xf32>
    %c0_6 = arith.constant 0 : index
    %c0_7 = arith.constant 0 : index
    %8 = vector.load %arg4[%c0_6, %c0_7] : memref<1x512xf32, #tpu.memory_space<vmem>>, vector<1x512xf32>
    %9 = vector.broadcast %8 : vector<1x512xf32> to vector<128x512xf32>
    %10 = arith.mulf %7, %9 : vector<128x512xf32>
    %cst_8 = arith.constant dense<0.000000e+00> : vector<128xf32>
    %11 = vector.multi_reduction <add>, %10, %cst_8 [1] : vector<128x512xf32> to vector<128xf32>
    %12 = vector.shape_cast %11 : vector<128xf32> to vector<1x128xf32>
    %c0_9 = arith.constant 0 : index
    %c0_10 = arith.constant 0 : index
    %13 = vector.load %arg5[%c0_9, %c0_10] : memref<1x1xf32, #tpu.memory_space<vmem>>, vector<1x1xf32>
    %14 = vector.broadcast %13 : vector<1x1xf32> to vector<1x128xf32>
    %15 = arith.addf %12, %14 : vector<1x128xf32>
    %c0_11 = arith.constant 0 : index
    %c0_12 = arith.constant 0 : index
    %16 = vector.load %arg6[%c0_11, %c0_12] : memref<1x128xf32, #tpu.memory_space<vmem>>, vector<1x128xf32>
    tpu.vector_store %arg6[%c0_11, %c0_12], %15 {strides = array<i32>} : memref<1x128xf32, #tpu.memory_space<vmem>>, vector<1x128xf32>,
    return
  }
  func.func @transform_0(%arg0: i32) -> (i32, i32) {
    %c0_i32 = arith.constant 0 : i32
    %c0_i32_0 = arith.constant 0 : i32
    return %arg0, %c0_i32 : i32, i32
  }
  func.func @transform_1(%arg0: i32) -> (i32, i32) {
    %c0_i32 = arith.constant 0 : i32
    %c0_i32_0 = arith.constant 0 : i32
    %c0_i32_1 = arith.constant 0 : i32
    return %c0_i32, %c0_i32_0 : i32, i32
  }
  func.func @transform_2(%arg0: i32) -> (i32, i32) {
    %c0_i32 = arith.constant 0 : i32
    %c0_i32_0 = arith.constant 0 : i32
    %c0_i32_1 = arith.constant 0 : i32
    return %c0_i32, %c0_i32_0 : i32, i32
  }
  func.func @transform_3(%arg0: i32) -> (i32, i32) {
    %c0_i32 = arith.constant 0 : i32
    %c0_i32_0 = arith.constant 0 : i32
    %c0_i32_1 = arith.constant 0 : i32
    return %c0_i32, %c0_i32_0 : i32, i32
  }
  func.func @transform_4(%arg0: i32) -> (i32, i32) {
    %c0_i32 = arith.constant 0 : i32
    %c0_i32_0 = arith.constant 0 : i32
    %c0_i32_1 = arith.constant 0 : i32
    return %c0_i32, %c0_i32_0 : i32, i32
  }
  func.func @transform_5(%arg0: i32) -> (i32, i32) {
    %c0_i32 = arith.constant 0 : i32
    %c0_i32_0 = arith.constant 0 : i32
    return %c0_i32, %arg0 : i32, i32
  }
}

</mosaic_0001>

<bundles_post_ra>
// kernel: centralized_critic.1
= control target key start
LH: loop header
LB: loop body
LE: loop exit
PB: predicated region body
PF: predicated region fallthrough
CT: control target
= control target key end

     0   :  { %v1015_v1 = vmov 0   ;;  %v73_v42 = vlaneseq  ;;  %vm810_vm0 = vcmask 130112   ;;  %vm817_vm1 = vcmask 195712   ;;  %s1408_s1 = inlined_call_operand.vmem [shape: bf16[128,512], index: 1, kind: input, shape index: {}]   ;;  %s1409_s0 = inlined_call_operand.vmem [shape: bf16[128,128], index: 0, kind: input, shape index: {}]   ;;  %s1410_s4 = inlined_call_operand.<no memory space> [shape: f32[1,1], index: 4, kind: input, shape index: {}]   ;;  %s1411_s2 = inlined_call_operand.vmem [shape: f32[1,512], index: 2, kind: input, shape index: {}]   ;;  %s1412_s3 = inlined_call_operand.vmem [shape: f32[1,512], index: 3, kind: input, shape index: {}]   ;;  %s1413_s5 = inlined_call_operand.vmem [shape: f32[1,128], index: 5, kind: output, shape index: {}]  }
   0x1   :  { %v959_v0 = vld [vmem:[%s1408_s1 + $0xe4] ss:$16 sps:$4 sm:$0xff]   ;;  %333 = vmatprep.mubr.bf16.mxu0 %v1015_v1  ;;  %446 = vmatprep.mubr.bf16.mxu1 %v1015_v1  ;;  %v961_v2 = vld [vmem:[%s1408_s1 + $0xec] ss:$16 sps:$4 sm:$0xff]   ;;  %v963_v3 = vld [vmem:[%s1408_s1 + $0xe0] ss:$16 sps:$4 sm:$0xff]   ;;  %v10_v41 = vstv %s1410_s4 }
   0x2   :  { %957 = vset.pattern.permute.xlu1 %v1015_v1  ;;  %958 = vset.pattern.permute.xlu0 %v1015_v1  ;;  %v964_v4 = vld [vmem:[%s1408_s1 + $0xe8] ss:$16 sps:$4 sm:$0xff]   ;;  %v965_v5 = vld [vmem:[%s1408_s1 + $0xc4] ss:$16 sps:$4 sm:$0xff]   ;;  %v967_v6 = vld [vmem:[%s1408_s1 + $0xcc] ss:$16 sps:$4 sm:$0xff]  }
   0x3   :  { %301 = vmatprep.subr.bf16.mxu0 %v959_v0  ;;  %414 = vmatprep.subr.bf16.mxu1 %v961_v2  ;;  %v969_v7 = vld [vmem:[%s1408_s1 + $0xc0] ss:$16 sps:$4 sm:$0xff]   ;;  %v970_v8 = vld [vmem:[%s1408_s1 + $0xc8] ss:$16 sps:$4 sm:$0xff]   ;;  %v971_v9 = vld [vmem:[%s1408_s1 + $0xa4] ss:$16 sps:$4 sm:$0xff]  }
   0x4   :  { %302 = vmatpush1.bf16.msra.mxu0 %v963_v3  ;;  %415 = vmatpush1.bf16.msra.mxu1 %v964_v4  ;;  %v973_v10 = vld [vmem:[%s1408_s1 + $0xac] ss:$16 sps:$4 sm:$0xff]   ;;  %v975_v11 = vld [vmem:[%s1408_s1 + $0xa0] ss:$16 sps:$4 sm:$0xff]   ;;  %v976_v12 = vld [vmem:[%s1408_s1 + $0xa8] ss:$16 sps:$4 sm:$0xff]  }
   0x5   :  { %303 = vmatprep.subr.bf16.mxu0 %v965_v5  ;;  %416 = vmatprep.subr.bf16.mxu1 %v967_v6  ;;  %v977_v13 = vld [vmem:[%s1408_s1 + $0x84] ss:$16 sps:$4 sm:$0xff]   ;;  %v979_v14 = vld [vmem:[%s1408_s1 + $0x8c] ss:$16 sps:$4 sm:$0xff]   ;;  %v981_v15 = vld [vmem:[%s1408_s1 + $0x80] ss:$16 sps:$4 sm:$0xff]  }
   0x6   :  { %v982_v16 = vld [vmem:[%s1408_s1 + $0x88] ss:$16 sps:$4 sm:$0xff]   ;;  %v983_v17 = vld [vmem:[%s1408_s1 + $0x64] ss:$16 sps:$4 sm:$0xff]   ;;  %v985_v18 = vld [vmem:[%s1408_s1 + $0x6c] ss:$16 sps:$4 sm:$0xff]  }
   0x7   :  { %v987_v19 = vld [vmem:[%s1408_s1 + $0x60] ss:$16 sps:$4 sm:$0xff]   ;;  %v988_v20 = vld [vmem:[%s1408_s1 + $0x68] ss:$16 sps:$4 sm:$0xff]   ;;  %v989_v21 = vld [vmem:[%s1408_s1 + $0x44] ss:$16 sps:$4 sm:$0xff]  }
   0x8   :  { %304 = vmatpush1.bf16.msra.mxu0 %v969_v7  ;;  %417 = vmatpush1.bf16.msra.mxu1 %v970_v8  ;;  %v991_v22 = vld [vmem:[%s1408_s1 + $0x4c] ss:$16 sps:$4 sm:$0xff]   ;;  %v993_v23 = vld [vmem:[%s1408_s1 + $0x40] ss:$16 sps:$4 sm:$0xff]   ;;  %v994_v24 = vld [vmem:[%s1408_s1 + $0x48] ss:$16 sps:$4 sm:$0xff]  }
   0x9   :  { %305 = vmatprep.subr.bf16.mxu0 %v971_v9  ;;  %418 = vmatprep.subr.bf16.mxu1 %v973_v10  ;;  %v995_v25 = vld [vmem:[%s1408_s1 + $0x24] ss:$16 sps:$4 sm:$0xff]   ;;  %v997_v26 = vld [vmem:[%s1408_s1 + $0x2c] ss:$16 sps:$4 sm:$0xff]   ;;  %v999_v27 = vld [vmem:[%s1408_s1 + $0x20] ss:$16 sps:$4 sm:$0xff]  }
   0xa   :  { %v1000_v28 = vld [vmem:[%s1408_s1 + $0x28] ss:$16 sps:$4 sm:$0xff]   ;;  %v1001_v29 = vld [vmem:[%s1408_s1 + $0x4] ss:$16 sps:$4 sm:$0xff]   ;;  %v1003_v30 = vld [vmem:[%s1408_s1 + $0xc] ss:$16 sps:$4 sm:$0xff]  }
   0xb   :  { %v1005_v31 = vld [vmem:[%s1408_s1] ss:$16 sps:$4 sm:$0xff]   ;;  %v1006_v32 = vld [vmem:[%s1408_s1 + $0x8] ss:$16 sps:$4 sm:$0xff]   ;;  %11 = vst [vmem:[#allocation2] sm:$0x1] %v10_v41 }
   0xc   :  { %306 = vmatpush1.bf16.msra.mxu0 %v975_v11  ;;  %419 = vmatpush1.bf16.msra.mxu1 %v976_v12  ;;  %v1007_v33 = vld [vmem:[%s1409_s0] sm:$0xff]   ;;  %v1008_v34 = vld [vmem:[%s1409_s0 + $0x8] sm:$0xff]   ;;  %v1009_v35 = vld [vmem:[%s1409_s0 + $0x10] sm:$0xff]   ;;  %v1188_v43 = vshrl.u32 %v73_v42, 7  ;;  %vm824_vm2 = vcmask 261312   ;;  %vm831_vm3 = vcmask 326912  }
   0xd   :  { %307 = vmatprep.subr.bf16.mxu0 %v977_v13  ;;  %420 = vmatprep.subr.bf16.mxu1 %v979_v14  ;;  %v1010_v36 = vld [vmem:[%s1409_s0 + $0x18] sm:$0xff]   ;;  %v1011_v37 = vld [vmem:[%s1409_s0 + $0x20] sm:$0xff]   ;;  %v1012_v38 = vld [vmem:[%s1409_s0 + $0x28] sm:$0xff]   ;;  %vm838_vm4 = vcmask 392512   ;;  %vm845_vm5 = vcmask 458112   ;;  %vm852_vm6 = vcmask 523712  }
   0xe   :  { %v1013_v39 = vld [vmem:[%s1409_s0 + $0x30] sm:$0xff]   ;;  %v1014_v40 = vld [vmem:[%s1409_s0 + $0x38] sm:$0xff]   ;;  %v1191_v44 = vsub.s32 0, %v1188_v43  ;;  %v83_v45 = vsub.s32 2, %v1188_v43  ;;  %v71_v46 = vld [vmem:[%s1411_s2] sm:$0xf] }
   0xf   :  { %v79_v47 = vsub.s32 1, %v1188_v43  ;;  %v87_v48 = vsub.s32 3, %v1188_v43  ;;  %v591_v56 = vld [vmem:[%s1412_s3] sm:$0xf]  ;;  %vm859_vm7 = vcmask 589312   ;;  %vm866_vm8 = vcmask 654912  }
  0x10   :  { %308 = vmatpush1.bf16.msra.mxu0 %v981_v15  ;;  %421 = vmatpush1.bf16.msra.mxu1 %v982_v16  ;;  %v1200_v49 = vrot.slane %v71_v46, %v1191_v44  ;;  %v1202_v50 = vrot.slane %v71_v46, %v83_v45  ;;  %v1218_v0 = vrot.slane %v591_v56, %v1191_v44  ;;  %vm873_vm9 = vcmask 720512  }
  0x11   :  { %309 = vmatprep.subr.bf16.mxu0 %v983_v17  ;;  %422 = vmatprep.subr.bf16.mxu1 %v985_v18  ;;  %v1204_v51 = vrot.slane %v71_v46, %v79_v47  ;;  %v1206_v52 = vrot.slane %v71_v46, %v87_v48  ;;  %v1214_v61 = vrot.slane %v591_v56, %v79_v47  ;;  %vm880_vm10 = vcmask 786112  }
  0x12   :  { %v1220_v2 = vrot.slane %v591_v56, %v83_v45  ;;  %v1224_v11 = vrot.slane %v591_v56, %v87_v48  ;;  %vm887_vm11 = vcmask 851712   ;;  %vm894_vm12 = vcmask 917312  }
  0x13   :  { %vm901_vm13 = vcmask 982912   ;;  %vm908_vm14 = vcmask 1048512  }
  0x14   :  { %310 = vmatpush1.bf16.msra.mxu0 %v987_v19  ;;  %423 = vmatpush1.bf16.msra.mxu1 %v988_v20 }
  0x15   :  { %311 = vmatprep.subr.bf16.mxu0 %v989_v21  ;;  %424 = vmatprep.subr.bf16.mxu1 %v991_v22 }
  0x18   :  { %312 = vmatpush1.bf16.msra.mxu0 %v993_v23  ;;  %425 = vmatpush1.bf16.msra.mxu1 %v994_v24 }
  0x19   :  { %313 = vmatprep.subr.bf16.mxu0 %v995_v25  ;;  %426 = vmatprep.subr.bf16.mxu1 %v997_v26 }
  0x1c   :  { %314 = vmatpush1.bf16.msra.mxu0 %v999_v27  ;;  %427 = vmatpush1.bf16.msra.mxu1 %v1000_v28 }
  0x1d   :  { %315 = vmatprep.subr.bf16.mxu0 %v1001_v29  ;;  %428 = vmatprep.subr.bf16.mxu1 %v1003_v30 }
  0x20   :  { %316 = vmatpush1.bf16.msra.mxu0 %v1005_v31  ;;  %429 = vmatpush1.bf16.msra.mxu1 %v1006_v32 }
  0x23   :  { %334 = vmatmul.mubr.bf16.vlgmr.msra.gmra.mxu0 %v1007_v33  ;;  %447 = vmatmul.mubr.bf16.vlgmr.msra.gmra.mxu1 %v1007_v33 }
  0x24   :  { %343 = vmatprep.mubr.bf16.mxu0 %v1015_v1  ;;  %456 = vmatprep.mubr.bf16.mxu1 %v1015_v1 }
  0x2b   :  { %344 = vmatmul.mubr.bf16.gmra.mxu0 %v1008_v34  ;;  %457 = vmatmul.mubr.bf16.gmra.mxu1 %v1008_v34 }
  0x2c   :  { %353 = vmatprep.mubr.bf16.mxu0 %v1015_v1  ;;  %466 = vmatprep.mubr.bf16.mxu1 %v1015_v1 }
  0x33   :  { %354 = vmatmul.mubr.bf16.gmra.mxu0 %v1009_v35  ;;  %467 = vmatmul.mubr.bf16.gmra.mxu1 %v1009_v35 }
  0x34   :  { %363 = vmatprep.mubr.bf16.mxu0 %v1015_v1  ;;  %476 = vmatprep.mubr.bf16.mxu1 %v1015_v1 }
  0x3b   :  { %364 = vmatmul.mubr.bf16.gmra.mxu0 %v1010_v36  ;;  %477 = vmatmul.mubr.bf16.gmra.mxu1 %v1010_v36 }
  0x3c   :  { %373 = vmatprep.mubr.bf16.mxu0 %v1015_v1  ;;  %486 = vmatprep.mubr.bf16.mxu1 %v1015_v1 }
  0x43   :  { %374 = vmatmul.mubr.bf16.gmra.mxu0 %v1011_v37  ;;  %487 = vmatmul.mubr.bf16.gmra.mxu1 %v1011_v37 }
  0x44   :  { %383 = vmatprep.mubr.bf16.mxu0 %v1015_v1  ;;  %496 = vmatprep.mubr.bf16.mxu1 %v1015_v1 }
  0x4b   :  { %384 = vmatmul.mubr.bf16.gmra.mxu0 %v1012_v38  ;;  %497 = vmatmul.mubr.bf16.gmra.mxu1 %v1012_v38 }
  0x4c   :  { %393 = vmatprep.mubr.bf16.mxu0 %v1015_v1  ;;  %506 = vmatprep.mubr.bf16.mxu1 %v1015_v1 }
  0x53   :  { %394 = vmatmul.mubr.bf16.gmra.mxu0 %v1013_v39  ;;  %507 = vmatmul.mubr.bf16.gmra.mxu1 %v1013_v39 }
  0x54   :  { %403 = vmatprep.mubr.bf16.mxu0 %v1015_v1  ;;  %516 = vmatprep.mubr.bf16.mxu1 %v1015_v1 }
  0x5b   :  { %404 = vmatmul.mubr.bf16.gmra.mxu0 %v1014_v40  ;;  %517 = vmatmul.mubr.bf16.gmra.mxu1 %v1014_v40 }
  0xe3   :  { %v335_v53 = vpop.f32.mrf.mxu0  ;;  %v448_v54 = vpop.f32.mrf.mxu1 }
  0xe4   :  { %v336_v55 = vadd.f32 %v335_v53, %v1200_v49  ;;  %v449_v57 = vadd.f32 %v448_v54, %v1202_v50 }
  0xe5   :  { %v337_v58 = vpop.f32.mrf.mxu0  ;;  %v450_v59 = vpop.f32.mrf.mxu1 }
  0xe6   :  { %v338_v60 = vadd.f32 %v337_v58, %v1204_v51  ;;  %v451_v62 = vadd.f32 %v450_v59, %v1206_v52  ;;  %v527_v63 = vmax.f32 %v336_v55, 0.0  ;;  %v529_v1 = vmax.f32 %v449_v57, 0.0 }
  0xe7   :  { %v339_v3 = vpop.f32.mrf.mxu0  ;;  %v452_v4 = vpop.f32.mrf.mxu1 }
  0xe8   :  { %v528_v5 = vmax.f32 %v338_v60, 0.0  ;;  %v530_v6 = vmax.f32 %v451_v62, 0.0  ;;  %v340_v7 = vadd.f32 %v339_v3, %v1200_v49  ;;  %v453_v8 = vadd.f32 %v452_v4, %v1202_v50 }
  0xe9   :  { %v341_v9 = vpop.f32.mrf.mxu0  ;;  %v454_v10 = vpop.f32.mrf.mxu1  ;;  %v613_v15 = vmul.f32 %v1218_v0, %v527_v63  ;;  %v615_v16 = vmul.f32 %v1220_v2, %v529_v1 }
  0xea   :  { %v614_v12 = vmul.f32 %v1214_v61, %v528_v5  ;;  %v342_v13 = vadd.f32 %v341_v9, %v1204_v51  ;;  %v455_v14 = vadd.f32 %v454_v10, %v1206_v52  ;;  %v531_v17 = vmax.f32 %v340_v7, 0.0 }
  0xeb   :  { %v345_v18 = vpop.f32.mrf.mxu0  ;;  %v458_v19 = vpop.f32.mrf.mxu1  ;;  %v533_v20 = vmax.f32 %v453_v8, 0.0  ;;  %v616_v26 = vmul.f32 %v1224_v11, %v530_v6 }
  0xec   :  { %v532_v21 = vmax.f32 %v342_v13, 0.0  ;;  %v346_v22 = vadd.f32 %v345_v18, %v1200_v49  ;;  %v459_v23 = vadd.f32 %v458_v19, %v1202_v50  ;;  %v677_v27 = vadd.f32 %v614_v12, %v613_v15 }
  0xed   :  { %v347_v24 = vpop.f32.mrf.mxu0  ;;  %v460_v25 = vpop.f32.mrf.mxu1  ;;  %v617_v28 = vmul.f32 %v1218_v0, %v531_v17  ;;  %v534_v30 = vmax.f32 %v455_v14, 0.0  ;;  %v619_v38 = vmul.f32 %v1220_v2, %v533_v20 }
  0xee   :  { %v618_v29 = vmul.f32 %v1214_v61, %v532_v21  ;;  %v535_v31 = vmax.f32 %v346_v22, 0.0  ;;  %v537_v32 = vmax.f32 %v459_v23, 0.0  ;;  %v348_v33 = vadd.f32 %v347_v24, %v1204_v51 }
  0xef   :  { %v461_v34 = vadd.f32 %v460_v25, %v1206_v52  ;;  %v349_v35 = vpop.f32.mrf.mxu0  ;;  %v462_v36 = vpop.f32.mrf.mxu1  ;;  %v678_v37 = vadd.f32 %v677_v27, %v615_v16  ;;  %v620_v54 = vmul.f32 %v1224_v11, %v534_v30 }
  0xf0   :  { %v682_v39 = vadd.f32 %v618_v29, %v617_v28  ;;  %v350_v40 = vadd.f32 %v349_v35, %v1200_v49  ;;  %v536_v41 = vmax.f32 %v348_v33, 0.0  ;;  %v463_v46 = vadd.f32 %v462_v36, %v1202_v50 }
  0xf1   :  { %v538_v45 = vmax.f32 %v461_v34, 0.0  ;;  %v351_v47 = vpop.f32.mrf.mxu0  ;;  %v464_v48 = vpop.f32.mrf.mxu1  ;;  %v679_v53 = vadd.f32 %v678_v37, %v616_v26  ;;  %v621_v58 = vmul.f32 %v1218_v0, %v535_v31  ;;  %v623_v59 = vmul.f32 %v1220_v2, %v537_v32 }
  0xf2   :  { %v539_v55 = vmax.f32 %v350_v40, 0.0  ;;  %v352_v56 = vadd.f32 %v351_v47, %v1204_v51  ;;  %v683_v57 = vadd.f32 %v682_v39, %v619_v38  ;;  %v622_v60 = vmul.f32 %v1214_v61, %v536_v41 }
  0xf3   :  { %v465_v62 = vadd.f32 %v464_v48, %v1206_v52  ;;  %680 = vadd.xlane.f32.xlu0 %v679_v53  ;;  %v355_v63 = vpop.f32.mrf.mxu0  ;;  %v468_v1 = vpop.f32.mrf.mxu1  ;;  %v541_v3 = vmax.f32 %v463_v46, 0.0  ;;  %v624_v10 = vmul.f32 %v1224_v11, %v538_v45 }
  0xf4   :  { %v540_v4 = vmax.f32 %v352_v56, 0.0  ;;  %v356_v5 = vadd.f32 %v355_v63, %v1200_v49  ;;  %v469_v6 = vadd.f32 %v468_v1, %v1202_v50  ;;  %v684_v9 = vadd.f32 %v683_v57, %v620_v54 }
  0xf5   :  { %v357_v7 = vpop.f32.mrf.mxu0  ;;  %v470_v8 = vpop.f32.mrf.mxu1  ;;  %v687_v12 = vadd.f32 %v622_v60, %v621_v58  ;;  %v625_v13 = vmul.f32 %v1218_v0, %v539_v55  ;;  %v542_v17 = vmax.f32 %v465_v62, 0.0  ;;  %v627_v26 = vmul.f32 %v1220_v2, %v541_v3 }
  0xf6   :  { %v626_v14 = vmul.f32 %v1214_v61, %v540_v4  ;;  %v543_v15 = vmax.f32 %v356_v5, 0.0  ;;  %v358_v16 = vadd.f32 %v357_v7, %v1204_v51  ;;  %v545_v18 = vmax.f32 %v469_v6, 0.0 }
  0xf7   :  { %v471_v19 = vadd.f32 %v470_v8, %v1206_v52  ;;  %685 = vadd.xlane.f32.xlu0 %v684_v9  ;;  %v359_v20 = vpop.f32.mrf.mxu0  ;;  %v472_v21 = vpop.f32.mrf.mxu1  ;;  %v688_v22 = vadd.f32 %v687_v12, %v623_v59  ;;  %v628_v36 = vmul.f32 %v1224_v11, %v542_v17 }
  0xf8   :  { %v692_v23 = vadd.f32 %v626_v14, %v625_v13  ;;  %v544_v24 = vmax.f32 %v358_v16, 0.0  ;;  %v360_v25 = vadd.f32 %v359_v20, %v1200_v49  ;;  %v629_v27 = vmul.f32 %v1218_v0, %v543_v15 }
  0xf9   :  { %v473_v28 = vadd.f32 %v472_v21, %v1202_v50  ;;  %v361_v29 = vpop.f32.mrf.mxu0  ;;  %v474_v30 = vpop.f32.mrf.mxu1  ;;  %v689_v31 = vadd.f32 %v688_v22, %v624_v10  ;;  %v631_v37 = vmul.f32 %v1220_v2, %v545_v18  ;;  %v546_v38 = vmax.f32 %v471_v19, 0.0 }
  0xfa   :  { %v630_v32 = vmul.f32 %v1214_v61, %v544_v24  ;;  %v547_v33 = vmax.f32 %v360_v25, 0.0  ;;  %v362_v34 = vadd.f32 %v361_v29, %v1204_v51  ;;  %v475_v35 = vadd.f32 %v474_v30, %v1206_v52 }
  0xfb   :  { %690 = vadd.xlane.f32.xlu1 %v689_v31  ;;  %v365_v39 = vpop.f32.mrf.mxu0  ;;  %v693_v40 = vadd.f32 %v692_v23, %v627_v26  ;;  %v478_v41 = vpop.f32.mrf.mxu1  ;;  %v549_v46 = vmax.f32 %v473_v28, 0.0  ;;  %v632_v63 = vmul.f32 %v1224_v11, %v546_v38 }
  0xfc   :  { %v697_v45 = vadd.f32 %v630_v32, %v629_v27  ;;  %v548_v47 = vmax.f32 %v362_v34, 0.0  ;;  %v633_v48 = vmul.f32 %v1218_v0, %v547_v33  ;;  %v366_v53 = vadd.f32 %v365_v39, %v1200_v49 }
  0xfd   :  { %v367_v54 = vpop.f32.mrf.mxu0  ;;  %v694_v55 = vadd.f32 %v693_v40, %v628_v36  ;;  %v479_v56 = vadd.f32 %v478_v41, %v1202_v50  ;;  %v480_v57 = vpop.f32.mrf.mxu1  ;;  %v550_v59 = vmax.f32 %v475_v35, 0.0  ;;  %v635_v7 = vmul.f32 %v1220_v2, %v549_v46 }
  0xfe   :  { %v634_v58 = vmul.f32 %v1214_v61, %v548_v47  ;;  %v368_v60 = vadd.f32 %v367_v54, %v1204_v51  ;;  %v481_v62 = vadd.f32 %v480_v57, %v1206_v52  ;;  %v551_v1 = vmax.f32 %v366_v53, 0.0 }
  0xff   :  { %695 = vadd.xlane.f32.xlu1 %v694_v55  ;;  %v369_v3 = vpop.f32.mrf.mxu0  ;;  %v553_v4 = vmax.f32 %v479_v56, 0.0  ;;  %v698_v5 = vadd.f32 %v697_v45, %v631_v37  ;;  %v482_v6 = vpop.f32.mrf.mxu1  ;;  %v636_v18 = vmul.f32 %v1224_v11, %v550_v59 }
 0x100   :  { %v702_v8 = vadd.f32 %v634_v58, %v633_v48  ;;  %v552_v9 = vmax.f32 %v368_v60, 0.0  ;;  %v370_v10 = vadd.f32 %v369_v3, %v1200_v49  ;;  %v637_v12 = vmul.f32 %v1218_v0, %v551_v1 }
 0x101   :  { %v371_v13 = vpop.f32.mrf.mxu0  ;;  %v554_v14 = vmax.f32 %v481_v62, 0.0  ;;  %v699_v15 = vadd.f32 %v698_v5, %v632_v63  ;;  %v483_v16 = vadd.f32 %v482_v6, %v1202_v50  ;;  %v484_v17 = vpop.f32.mrf.mxu1  ;;  %v639_v22 = vmul.f32 %v1220_v2, %v553_v4 }
 0x102   :  { %v638_v19 = vmul.f32 %v1214_v61, %v552_v9  ;;  %v555_v20 = vmax.f32 %v370_v10, 0.0  ;;  %v372_v21 = vadd.f32 %v371_v13, %v1204_v51  ;;  %v485_v25 = vadd.f32 %v484_v17, %v1206_v52 }
 0x103   :  { %700 = vadd.xlane.f32.xlu0 %v699_v15  ;;  %v375_v23 = vpop.f32.mrf.mxu0  ;;  %v557_v24 = vmax.f32 %v483_v16, 0.0  ;;  %v703_v26 = vadd.f32 %v702_v8, %v635_v7  ;;  %v488_v27 = vpop.f32.mrf.mxu1  ;;  %v640_v32 = vmul.f32 %v1224_v11, %v554_v14 }
 0x104   :  { %v707_v28 = vadd.f32 %v638_v19, %v637_v12  ;;  %v641_v29 = vmul.f32 %v1218_v0, %v555_v20  ;;  %v556_v30 = vmax.f32 %v372_v21, 0.0  ;;  %v376_v31 = vadd.f32 %v375_v23, %v1200_v49 }
 0x105   :  { %v377_v33 = vpop.f32.mrf.mxu0  ;;  %v558_v34 = vmax.f32 %v485_v25, 0.0  ;;  %v704_v35 = vadd.f32 %v703_v26, %v636_v18  ;;  %v489_v36 = vadd.f32 %v488_v27, %v1202_v50  ;;  %v490_v37 = vpop.f32.mrf.mxu1  ;;  %v643_v45 = vmul.f32 %v1220_v2, %v557_v24 }
 0x106   :  { %v642_v38 = vmul.f32 %v1214_v61, %v556_v30  ;;  %v559_v39 = vmax.f32 %v376_v31, 0.0  ;;  %v378_v40 = vadd.f32 %v377_v33, %v1204_v51  ;;  %v491_v41 = vadd.f32 %v490_v37, %v1206_v52 }
 0x107   :  { %705 = vadd.xlane.f32.xlu1 %v704_v35  ;;  %v379_v46 = vpop.f32.mrf.mxu0  ;;  %v561_v47 = vmax.f32 %v489_v36, 0.0  ;;  %v708_v48 = vadd.f32 %v707_v28, %v639_v22  ;;  %v492_v53 = vpop.f32.mrf.mxu1  ;;  %v644_v58 = vmul.f32 %v1224_v11, %v558_v34 }
 0x108   :  { %v712_v54 = vadd.f32 %v642_v38, %v641_v29  ;;  %v645_v55 = vmul.f32 %v1218_v0, %v559_v39  ;;  %v560_v56 = vmax.f32 %v378_v40, 0.0  ;;  %v380_v57 = vadd.f32 %v379_v46, %v1200_v49 }
 0x109   :  { %v381_v59 = vpop.f32.mrf.mxu0  ;;  %v562_v60 = vmax.f32 %v491_v41, 0.0  ;;  %v709_v62 = vadd.f32 %v708_v48, %v640_v32  ;;  %v493_v63 = vadd.f32 %v492_v53, %v1202_v50  ;;  %v494_v1 = vpop.f32.mrf.mxu1  ;;  %v647_v7 = vmul.f32 %v1220_v2, %v561_v47 }
 0x10a   :  { %v646_v3 = vmul.f32 %v1214_v61, %v560_v56  ;;  %v563_v4 = vmax.f32 %v380_v57, 0.0  ;;  %v382_v5 = vadd.f32 %v381_v59, %v1204_v51  ;;  %v495_v6 = vadd.f32 %v494_v1, %v1206_v52 }
 0x10b   :  { %710 = vadd.xlane.f32.xlu0 %v709_v62  ;;  %v385_v8 = vpop.f32.mrf.mxu0  ;;  %v565_v9 = vmax.f32 %v493_v63, 0.0  ;;  %v713_v10 = vadd.f32 %v712_v54, %v643_v45  ;;  %v498_v12 = vpop.f32.mrf.mxu1  ;;  %v648_v17 = vmul.f32 %v1224_v11, %v562_v60 }
 0x10c   :  { %v717_v13 = vadd.f32 %v646_v3, %v645_v55  ;;  %v649_v14 = vmul.f32 %v1218_v0, %v563_v4  ;;  %v564_v15 = vmax.f32 %v382_v5, 0.0  ;;  %v386_v16 = vadd.f32 %v385_v8, %v1200_v49 }
 0x10d   :  { %v387_v18 = vpop.f32.mrf.mxu0  ;;  %v566_v19 = vmax.f32 %v495_v6, 0.0  ;;  %v714_v20 = vadd.f32 %v713_v10, %v644_v58  ;;  %v499_v21 = vadd.f32 %v498_v12, %v1202_v50  ;;  %v500_v22 = vpop.f32.mrf.mxu1  ;;  %v651_v27 = vmul.f32 %v1220_v2, %v565_v9 }
 0x10e   :  { %v650_v23 = vmul.f32 %v1214_v61, %v564_v15  ;;  %v567_v24 = vmax.f32 %v386_v16, 0.0  ;;  %v388_v25 = vadd.f32 %v387_v18, %v1204_v51  ;;  %v501_v26 = vadd.f32 %v500_v22, %v1206_v52 }
 0x10f   :  { %715 = vadd.xlane.f32.xlu0 %v714_v20  ;;  %v389_v28 = vpop.f32.mrf.mxu0  ;;  %v569_v29 = vmax.f32 %v499_v21, 0.0  ;;  %v718_v30 = vadd.f32 %v717_v13, %v647_v7  ;;  %v502_v31 = vpop.f32.mrf.mxu1  ;;  %v652_v36 = vmul.f32 %v1224_v11, %v566_v19  ;;  %v757_v7 = vld [vmem:[#allocation2] sm:$0x1] }
 0x110   :  { %v722_v32 = vadd.f32 %v650_v23, %v649_v14  ;;  %v653_v33 = vmul.f32 %v1218_v0, %v567_v24  ;;  %v568_v34 = vmax.f32 %v388_v25, 0.0  ;;  %v390_v35 = vadd.f32 %v389_v28, %v1200_v49 }
 0x111   :  { %v391_v37 = vpop.f32.mrf.mxu0  ;;  %v570_v38 = vmax.f32 %v501_v26, 0.0  ;;  %v719_v39 = vadd.f32 %v718_v30, %v648_v17  ;;  %v503_v40 = vadd.f32 %v502_v31, %v1202_v50  ;;  %v504_v41 = vpop.f32.mrf.mxu1  ;;  %v655_v53 = vmul.f32 %v1220_v2, %v569_v29 }
 0x112   :  { %v654_v45 = vmul.f32 %v1214_v61, %v568_v34  ;;  %v571_v46 = vmax.f32 %v390_v35, 0.0  ;;  %v392_v47 = vadd.f32 %v391_v37, %v1204_v51  ;;  %v505_v48 = vadd.f32 %v504_v41, %v1206_v52 }
 0x113   :  { %v656_v54 = vmul.f32 %v1224_v11, %v570_v38  ;;  %720 = vadd.xlane.f32.xlu0 %v719_v39  ;;  %v395_v55 = vpop.f32.mrf.mxu0  ;;  %v573_v56 = vmax.f32 %v503_v40, 0.0  ;;  %v723_v57 = vadd.f32 %v722_v32, %v651_v27  ;;  %v508_v58 = vpop.f32.mrf.mxu1 }
 0x114   :  { %v727_v59 = vadd.f32 %v654_v45, %v653_v33  ;;  %v657_v60 = vmul.f32 %v1218_v0, %v571_v46  ;;  %v572_v62 = vmax.f32 %v392_v47, 0.0  ;;  %v396_v63 = vadd.f32 %v395_v55, %v1200_v49 }
 0x115   :  { %v659_v1 = vmul.f32 %v1220_v2, %v573_v56  ;;  %v397_v3 = vpop.f32.mrf.mxu0  ;;  %v574_v4 = vmax.f32 %v505_v48, 0.0  ;;  %v724_v5 = vadd.f32 %v723_v57, %v652_v36  ;;  %v509_v6 = vadd.f32 %v508_v58, %v1202_v50  ;;  %v510_v8 = vpop.f32.mrf.mxu1 }
 0x116   :  { %v658_v9 = vmul.f32 %v1214_v61, %v572_v62  ;;  %v575_v10 = vmax.f32 %v396_v63, 0.0  ;;  %v398_v12 = vadd.f32 %v397_v3, %v1204_v51  ;;  %v511_v13 = vadd.f32 %v510_v8, %v1206_v52 }
 0x117   :  { %v660_v14 = vmul.f32 %v1224_v11, %v574_v4  ;;  %725 = vadd.xlane.f32.xlu0 %v724_v5  ;;  %v399_v15 = vpop.f32.mrf.mxu0  ;;  %v577_v16 = vmax.f32 %v509_v6, 0.0  ;;  %v728_v17 = vadd.f32 %v727_v59, %v655_v53  ;;  %v512_v18 = vpop.f32.mrf.mxu1 }
 0x118   :  { %v732_v19 = vadd.f32 %v658_v9, %v657_v60  ;;  %v661_v20 = vmul.f32 %v1218_v0, %v575_v10  ;;  %v576_v21 = vmax.f32 %v398_v12, 0.0  ;;  %v400_v22 = vadd.f32 %v399_v15, %v1200_v49  ;;  %760 = vperm.xlu1 %957, %v757_v7  }
 0x119   :  { %v401_v23 = vpop.f32.mrf.mxu0  ;;  %v578_v24 = vmax.f32 %v511_v13, 0.0  ;;  %v729_v25 = vadd.f32 %v728_v17, %v656_v54  ;;  %v513_v26 = vadd.f32 %v512_v18, %v1202_v50  ;;  %v514_v27 = vpop.f32.mrf.mxu1  ;;  %v663_v32 = vmul.f32 %v1220_v2, %v577_v16 }
 0x11a   :  { %v662_v28 = vmul.f32 %v1214_v61, %v576_v21  ;;  %v579_v29 = vmax.f32 %v400_v22, 0.0  ;;  %v402_v30 = vadd.f32 %v401_v23, %v1204_v51  ;;  %v515_v31 = vadd.f32 %v514_v27, %v1206_v52 }
 0x11b   :  { %730 = vadd.xlane.f32.xlu0 %v729_v25  ;;  %v405_v33 = vpop.f32.mrf.mxu0  ;;  %v581_v34 = vmax.f32 %v513_v26, 0.0  ;;  %v518_v35 = vpop.f32.mrf.mxu1  ;;  %v733_v36 = vadd.f32 %v732_v19, %v659_v1  ;;  %v664_v41 = vmul.f32 %v1224_v11, %v578_v24 }
 0x11c   :  { %v737_v37 = vadd.f32 %v662_v28, %v661_v20  ;;  %v665_v38 = vmul.f32 %v1218_v0, %v579_v29  ;;  %v580_v39 = vmax.f32 %v402_v30, 0.0  ;;  %v406_v40 = vadd.f32 %v405_v33, %v1200_v49 }
 0x11d   :  { %v407_v45 = vpop.f32.mrf.mxu0  ;;  %v582_v46 = vmax.f32 %v515_v31, 0.0  ;;  %v519_v47 = vadd.f32 %v518_v35, %v1202_v50  ;;  %v520_v48 = vpop.f32.mrf.mxu1  ;;  %v734_v53 = vadd.f32 %v733_v36, %v660_v14  ;;  %v667_v58 = vmul.f32 %v1220_v2, %v581_v34 }
 0x11e   :  { %v666_v54 = vmul.f32 %v1214_v61, %v580_v39  ;;  %v583_v55 = vmax.f32 %v406_v40, 0.0  ;;  %v408_v56 = vadd.f32 %v407_v45, %v1204_v51  ;;  %v521_v57 = vadd.f32 %v520_v48, %v1206_v52 }
 0x11f   :  { %v668_v59 = vmul.f32 %v1224_v11, %v582_v46  ;;  %v409_v60 = vpop.f32.mrf.mxu0  ;;  %v585_v62 = vmax.f32 %v519_v47, 0.0  ;;  %v738_v63 = vadd.f32 %v737_v37, %v663_v32  ;;  %v522_v1 = vpop.f32.mrf.mxu1 }
 0x120   :  { %v742_v3 = vadd.f32 %v666_v54, %v665_v38  ;;  %v669_v4 = vmul.f32 %v1218_v0, %v583_v55  ;;  %v584_v5 = vmax.f32 %v408_v56, 0.0  ;;  %v410_v6 = vadd.f32 %v409_v60, %v1200_v49 }
 0x121   :  { %v671_v7 = vmul.f32 %v1220_v2, %v585_v62  ;;  %v411_v8 = vpop.f32.mrf.mxu0  ;;  %v586_v9 = vmax.f32 %v521_v57, 0.0  ;;  %v739_v10 = vadd.f32 %v738_v63, %v664_v41  ;;  %v523_v12 = vadd.f32 %v522_v1, %v1202_v50  ;;  %v524_v13 = vpop.f32.mrf.mxu1 }
 0x122   :  { %v670_v14 = vmul.f32 %v1214_v61, %v584_v5  ;;  %v587_v15 = vmax.f32 %v410_v6, 0.0  ;;  %v412_v16 = vadd.f32 %v411_v8, %v1204_v51  ;;  %v525_v17 = vadd.f32 %v524_v13, %v1206_v52 }
 0x123   :  { %v672_v18 = vmul.f32 %v1224_v11, %v586_v9  ;;  %740 = vadd.xlane.f32.xlu0 %v739_v10  ;;  %v589_v19 = vmax.f32 %v523_v12, 0.0  ;;  %v743_v49 = vadd.f32 %v742_v3, %v667_v58 }
 0x124   :  { %v747_v20 = vadd.f32 %v670_v14, %v669_v4  ;;  %v673_v21 = vmul.f32 %v1218_v0, %v587_v15  ;;  %v588_v22 = vmax.f32 %v412_v16, 0.0  ;;  %v590_v23 = vmax.f32 %v525_v17, 0.0 }
 0x125   :  { %v744_v24 = vadd.f32 %v743_v49, %v668_v59  ;;  %v675_v25 = vmul.f32 %v1220_v2, %v589_v19  ;;  %v1349_v2 = vand.u32 127, %v73_v42 }
 0x126   :  { %v674_v50 = vmul.f32 %v1214_v61, %v588_v22  ;;  %v748_v26 = vadd.f32 %v747_v20, %v671_v7  ;;  %v676_v52 = vmul.f32 %v1224_v11, %v590_v23 }
 0x127   :  { %745 = vadd.xlane.f32.xlu0 %v744_v24  ;;  %v805_v38 = vadd.s32 4294967288, %v1349_v2  ;;  %v812_v39 = vadd.s32 4294967280, %v1349_v2  ;;  %v803_v46 = vsub.s32 %v1349_v2, %v1188_v43  ;;  %v819_v54 = vadd.s32 4294967272, %v1349_v2 }
 0x128   :  { %v752_v51 = vadd.f32 %v674_v50, %v673_v21  ;;  %v749_v27 = vadd.f32 %v748_v26, %v672_v18  ;;  %v826_v57 = vadd.s32 4294967264, %v1349_v2  ;;  %v833_v63 = vadd.s32 4294967256, %v1349_v2 }
 0x129   :  { %v808_v42 = vsub.s32 %v805_v38, %v1188_v43  ;;  %v815_v48 = vsub.s32 %v812_v39, %v1188_v43  ;;  %v822_v60 = vsub.s32 %v819_v54, %v1188_v43  ;;  %v840_v6 = vadd.s32 4294967248, %v1349_v2 }
 0x12a   :  { %v753_v28 = vadd.f32 %v752_v51, %v675_v25  ;;  %v829_v4 = vsub.s32 %v826_v57, %v1188_v43  ;;  %v836_v9 = vsub.s32 %v833_v63, %v1188_v43  ;;  %v847_v13 = vadd.s32 4294967240, %v1349_v2 }
 0x12b   :  { %750 = vadd.xlane.f32.xlu0 %v749_v27  ;;  %v843_v15 = vsub.s32 %v840_v6, %v1188_v43  ;;  %v854_v17 = vadd.s32 4294967232, %v1349_v2  ;;  %v861_v19 = vadd.s32 4294967224, %v1349_v2  ;;  %v868_v49 = vadd.s32 4294967216, %v1349_v2 }
 0x12c   :  { %v754_v29 = vadd.f32 %v753_v28, %v676_v52  ;;  %v850_v21 = vsub.s32 %v847_v13, %v1188_v43  ;;  %v875_v52 = vadd.s32 4294967208, %v1349_v2 }
 0x12d   :  { %v857_v24 = vsub.s32 %v854_v17, %v1188_v43  ;;  %v864_v26 = vsub.s32 %v861_v19, %v1188_v43  ;;  %v871_v28 = vsub.s32 %v868_v49, %v1188_v43 }
 0x12f   :  { %755 = vadd.xlane.f32.xlu0 %v754_v29 }
 0x13c   :  { %735 = vadd.xlane.f32.xlu1 %v734_v53 }
 0x17c   :  { %v681_v30 = vpop.xlane.xlu0 %680 }
 0x180   :  { %v686_v0 = vpop.xlane.xlu0 %685 }
 0x184   :  { %v691_v31 = vpop.xlane.xlu1 %690 }
 0x188   :  { %v696_v34 = vpop.xlane.xlu1 %695 }
 0x18c   :  { %v701_v32 = vpop.xlane.xlu0 %700 }
 0x190   :  { %v706_v61 = vpop.xlane.xlu1 %705 }
 0x194   :  { %v711_v33 = vpop.xlane.xlu0 %710  ;;  %v761_v36 = vpop.permute.xlu1 %760 }
 0x195   :  { %v1352_v11 = vrot.slane %v761_v36, %v1191_v44  ;;  %v878_v36 = vsub.s32 %v875_v52, %v1188_v43 }
 0x197   :  { %v767_v41 = vadd.f32 %v1352_v11, %v681_v30  ;;  %v768_v45 = vadd.f32 %v1352_v11, %v686_v0  ;;  %v769_v47 = vadd.f32 %v1352_v11, %v691_v31  ;;  %v770_v58 = vadd.f32 %v1352_v11, %v696_v34 }
 0x198   :  { %v716_v35 = vpop.xlane.xlu0 %715  ;;  %v771_v1 = vadd.f32 %v1352_v11, %v701_v32  ;;  %v772_v7 = vadd.f32 %v1352_v11, %v706_v61  ;;  %v773_v16 = vadd.f32 %v1352_v11, %v711_v33  ;;  %v882_v30 = vadd.s32 4294967200, %v1349_v2 }
 0x199   :  { %v804_v44 = vrot.slane %v767_v41, %v803_v46  ;;  %v809_v53 = vrot.slane %v768_v45, %v808_v42  ;;  %v816_v56 = vrot.slane %v769_v47, %v815_v48  ;;  %v823_v5 = vrot.slane %v770_v58, %v822_v60 }
 0x19a   :  { %v830_v10 = vrot.slane %v771_v1, %v829_v4  ;;  %v837_v18 = vrot.slane %v772_v7, %v836_v9  ;;  %v774_v22 = vadd.f32 %v1352_v11, %v716_v35  ;;  %v844_v23 = vrot.slane %v773_v16, %v843_v15 }
 0x19b   :  { %v811_v59 = vsel %vm810_vm0, %v809_v53, %v804_v44  ;;  %v889_v31 = vadd.s32 4294967192, %v1349_v2  ;;  %v896_v32 = vadd.s32 4294967184, %v1349_v2  ;;  %v903_v34 = vadd.s32 4294967176, %v1349_v2 }
 0x19c   :  { %v721_v37 = vpop.xlane.xlu0 %720  ;;  %v818_v3 = vsel %vm817_vm1, %v816_v56, %v811_v59  ;;  %v851_v0 = vrot.slane %v774_v22, %v850_v21  ;;  %v885_v38 = vsub.s32 %v882_v30, %v1188_v43 }
 0x19d   :  { %v825_v8 = vsel %vm824_vm2, %v823_v5, %v818_v3  ;;  %v775_v50 = vadd.f32 %v1352_v11, %v721_v37  ;;  %v892_v45 = vsub.s32 %v889_v31, %v1188_v43  ;;  %v899_v42 = vsub.s32 %v896_v32, %v1188_v43 }
 0x19e   :  { %v832_v14 = vsel %vm831_vm3, %v830_v10, %v825_v8  ;;  %v906_v44 = vsub.s32 %v903_v34, %v1188_v43 }
 0x19f   :  { %v839_v20 = vsel %vm838_vm4, %v837_v18, %v832_v14  ;;  %v858_v33 = vrot.slane %v775_v50, %v857_v24 }
 0x1a0   :  { %v726_v40 = vpop.xlane.xlu0 %725  ;;  %v846_v27 = vsel %vm845_vm5, %v844_v23, %v839_v20 }
 0x1a1   :  { %v776_v51 = vadd.f32 %v1352_v11, %v726_v40  ;;  %v853_v61 = vsel %vm852_vm6, %v851_v0, %v846_v27 }
 0x1a2   :  { %v860_v47 = vsel %vm859_vm7, %v858_v33, %v853_v61 }
 0x1a3   :  { %v865_v35 = vrot.slane %v776_v51, %v864_v26 }
 0x1a4   :  { %v731_v55 = vpop.xlane.xlu0 %730 }
 0x1a5   :  { %v777_v29 = vadd.f32 %v1352_v11, %v731_v55  ;;  %v867_v53 = vsel %vm866_vm8, %v865_v35, %v860_v47 }
 0x1a7   :  { %v872_v37 = vrot.slane %v777_v29, %v871_v28 }
 0x1a9   :  { %v874_v56 = vsel %vm873_vm9, %v872_v37, %v867_v53 }
 0x1ac   :  { %v741_v62 = vpop.xlane.xlu0 %740 }
 0x1ad   :  { %v779_v39 = vadd.f32 %v1352_v11, %v741_v62 }
 0x1af   :  { %v886_v57 = vrot.slane %v779_v39, %v885_v38 }
 0x1b0   :  { %v746_v12 = vpop.xlane.xlu0 %745 }
 0x1b1   :  { %v780_v46 = vadd.f32 %v1352_v11, %v746_v12 }
 0x1b3   :  { %v893_v58 = vrot.slane %v780_v46, %v892_v45 }
 0x1b4   :  { %v751_v25 = vpop.xlane.xlu0 %750 }
 0x1b5   :  { %v781_v48 = vadd.f32 %v1352_v11, %v751_v25 }
 0x1b7   :  { %v900_v60 = vrot.slane %v781_v48, %v899_v42 }
 0x1b8   :  { %v756_v40 = vpop.xlane.xlu0 %755 }
 0x1b9   :  { %v782_v54 = vadd.f32 %v1352_v11, %v756_v40 }
 0x1bb   :  { %v907_v63 = vrot.slane %v782_v54, %v906_v44 }
 0x1c5   :  { %v736_v41 = vpop.xlane.xlu1 %735 }
 0x1c6   :  { %v778_v2 = vadd.f32 %v1352_v11, %v736_v41 }
 0x1c8   :  { %v879_v55 = vrot.slane %v778_v2, %v878_v36 }
 0x1ca   :  { %v881_v59 = vsel %vm880_vm10, %v879_v55, %v874_v56 }
 0x1cb   :  { %v888_v62 = vsel %vm887_vm11, %v886_v57, %v881_v59 }
 0x1cc   :  { %v895_v1 = vsel %vm894_vm12, %v893_v58, %v888_v62 }
 0x1cd   :  { %v902_v43 = vsel %vm901_vm13, %v900_v60, %v895_v1 }
 0x1ce   :  { %v909_v3 = vsel %vm908_vm14, %v907_v63, %v902_v43 }
 0x1cf   :  { %911 = vst [vmem:[%s1413_s5] sm:$0x1] %v909_v3 }

</bundles_post_ra>
